<compile_context>
chip_gen: v6e
topology: v6e:2x2x1
jax: 0.10.0
libtpu: 0.0.40
codegen_flags: <defaults>
</compile_context>

<pallas_src>
import functools

import jax
import jax.numpy as jnp
from jax import lax
from jax.experimental import pallas as pl
from jax.experimental.pallas import tpu as pltpu

# Python float literal (NOT a jnp constant -> nothing gets captured by the
# kernel trace).  Matches torch masked_fill_(mask == 0, -1e9).
_MASK_FILL = -1000000000.0


def _sdpa_kernel(*refs, inv_scale, has_mask, dot_dtype):
    """One (batch, q-tile) grid step; full-Lk K/V resident in VMEM."""
    if has_mask:
        q_ref, k_ref, v_ref, mask_ref, out_ref, attn_ref = refs
    else:
        q_ref, k_ref, v_ref, out_ref, attn_ref = refs
        mask_ref = None

    # Fold 1/scale into the small (TQ, D) Q tile instead of the (TQ, Lk)
    # scores.  Cast both MXU operands to bf16 (when inputs are f32) for full
    # MXU rate on v5e/v6e/v7x; accumulate in f32.
    q = q_ref[...].astype(jnp.float32)
    if inv_scale is not None:            # static branch (mirrors `if scale:`)
        q = q * inv_scale
    q = q.astype(dot_dtype)
    k = k_ref[...].astype(dot_dtype)

    # scores = Q @ K^T: contract last dim of both operands -> no K transpose
    # (no XLU relayout).
    scores = lax.dot_general(
        q, k,
        dimension_numbers=(((1,), (1,)), ((), ())),
        preferred_element_type=jnp.float32,
    )                                     # (TQ, Lk) f32

    if has_mask:
        scores = jnp.where(mask_ref[...] == 0, _MASK_FILL, scores)

    # Numerically stable softmax; only this block is f32 element math.
    m = jnp.max(scores, axis=-1, keepdims=True)
    e = jnp.exp(scores - m)
    denom = jnp.sum(e, axis=-1, keepdims=True)
    attn = e * (1.0 / denom)

    attn_ref[...] = attn.astype(attn_ref.dtype)

    # output = attention @ V (bf16 operands, f32 accumulate).
    out = jnp.dot(attn.astype(dot_dtype), v_ref[...].astype(dot_dtype),
                  preferred_element_type=jnp.float32)
    out_ref[...] = out.astype(out_ref.dtype)


def _pick_block_q(lq, target):
    """Largest q-tile <= target that evenly divides Lq (prefer multiples of 8)."""
    if lq <= target:
        return lq
    for tq in range(min(target, lq), 7, -1):
        if lq % tq == 0 and tq % 8 == 0:
            return tq
    for tq in range(min(target, lq), 0, -1):   # exact grid, never truncates
        if lq % tq == 0:
            return tq
    return lq


@functools.partial(jax.jit, static_argnames=("scale", "block_q"))
def scaled_dot_product_attention(Q, K, V, scale=None, mask=None, *, block_q=128):
    """Pallas implementation of ScaledDotProductAttention.forward.

    Q: (B, Lq, D), K: (B, Lk, D), V: (B, Lk, Dv),
    mask: optional array reshapeable to (B, Lq, Lk) (nonzero = keep),
    scale: optional Python scalar (static; `if scale:` truthiness like torch).
    Returns (output (B, Lq, Dv), attention (B, Lq, Lk)), both in Q.dtype.
    """
    B, Lq, D = Q.shape
    _, Lk, _ = K.shape
    Dv = V.shape[-1]

    tq = _pick_block_q(Lq, block_q)
    num_q_tiles = Lq // tq

    has_mask = mask is not None
    if has_mask:
        mask = jnp.reshape(mask, (B, Lq, Lk))          # torch: mask.view_as(scores)

    inv_scale = (1.0 / float(scale)) if scale else None  # Python float (static)

    # bf16 operands for the MXU when inputs are f32; otherwise keep input dtype.
    dot_dtype = jnp.bfloat16 if Q.dtype == jnp.float32 else Q.dtype

    in_specs = [
        pl.BlockSpec((None, tq, D), lambda b, qi: (b, qi, 0)),   # Q (q-tiled)
        pl.BlockSpec((None, Lk, D), lambda b, qi: (b, 0, 0)),    # K (resident over q)
        pl.BlockSpec((None, Lk, Dv), lambda b, qi: (b, 0, 0)),   # V (resident over q)
    ]
    inputs = [Q, K, V]
    if has_mask:
        # Stream the mask as-is; the `== 0` compare happens in-kernel.
        in_specs.append(pl.BlockSpec((None, tq, Lk), lambda b, qi: (b, qi, 0)))
        inputs.append(mask)

    out_specs = (
        pl.BlockSpec((None, tq, Dv), lambda b, qi: (b, qi, 0)),  # output
        pl.BlockSpec((None, tq, Lk), lambda b, qi: (b, qi, 0)),  # attention
    )
    out_shape = (
        jax.ShapeDtypeStruct((B, Lq, Dv), Q.dtype),
        jax.ShapeDtypeStruct((B, Lq, Lk), Q.dtype),
    )

    in_itemsize = jnp.dtype(Q.dtype).itemsize
    out_itemsize = in_itemsize
    mask_itemsize = jnp.dtype(mask.dtype).itemsize if has_mask else 0

    # Explicit VMEM budget: 2 pipeline buffers per block + f32 working set.
    block_bytes = 2 * (
        tq * D * in_itemsize            # Q tile
        + Lk * D * in_itemsize          # K (resident)
        + Lk * Dv * in_itemsize         # V (resident)
        + tq * Lk * mask_itemsize       # mask tile
        + tq * Dv * out_itemsize        # output tile
        + tq * Lk * out_itemsize        # attention tile
    )
    work_bytes = 3 * tq * Lk * 4        # scores / exp / attn f32 temporaries
    vmem_limit = min(100 * 1024 * 1024,
                     max(32 * 1024 * 1024, int(1.25 * (block_bytes + work_bytes))))

    cost = pl.CostEstimate(
        flops=int(2 * B * Lq * Lk * (D + Dv)),
        transcendentals=int(B * Lq * Lk),
        bytes_accessed=int(
            (B * Lq * D + B * Lk * D + B * Lk * Dv) * in_itemsize   # Q, K, V
            + B * Lq * Lk * mask_itemsize                           # mask
            + (B * Lq * Dv + B * Lq * Lk) * out_itemsize            # out, attn
        ),
    )

    kernel = functools.partial(_sdpa_kernel, inv_scale=inv_scale,
                               has_mask=has_mask, dot_dtype=dot_dtype)

    out, attn = pl.pallas_call(
        kernel,
        grid=(B, num_q_tiles),
        in_specs=in_specs,
        out_specs=out_specs,
        out_shape=out_shape,
        compiler_params=pltpu.CompilerParams(
            dimension_semantics=("parallel", "parallel"),
            vmem_limit_bytes=vmem_limit,
        ),
        cost_estimate=cost,
    )(*inputs)
    return out, attn


def _reference(Q, K, V, scale, mask):
    scores = jnp.einsum("bqd,bkd->bqk", Q, K)
    if scale:
        scores = scores / scale
    if mask is not None:
        scores = jnp.where(mask == 0.0, -1000000000.0, scores)
    attn = jax.nn.softmax(scores, axis=-1)
    out = jnp.einsum("bqk,bkv->bqv", attn, V)
    return out, attn


if __name__ == "__main__":
    key = jax.random.PRNGKey(0)

    def run_case(B, Lq, Lk, D, Dv, block_q, use_mask, k):
        kq, kk, kv, km = jax.random.split(k, 4)
        Q = jax.random.normal(kq, (B, Lq, D), dtype=jnp.float32)
        K = jax.random.normal(kk, (B, Lk, D), dtype=jnp.float32)
        V = jax.random.normal(kv, (B, Lk, Dv), dtype=jnp.float32)
        mask = None
        if use_mask:
            # deterministic 0/1 mask (1 = keep), as in masked_fill_(mask == 0, -1e9)
            mask = (jax.random.uniform(km, (B, Lq, Lk)) > 0.2).astype(jnp.float32)
        scale = float(D) ** 0.5

        out, attn = scaled_dot_product_attention(
            Q, K, V, scale=scale, mask=mask, block_q=block_q)
        out = jax.block_until_ready(out)
        attn = jax.block_until_ready(attn)

        ref_out, ref_attn = _reference(Q, K, V, scale, mask)
        # tolerance sized for bf16 MXU operands (f32 accumulate)
        assert jnp.allclose(out, ref_out, atol=2e-2, rtol=2e-2), "output mismatch"
        assert jnp.allclose(attn, ref_attn, atol=2e-2, rtol=2e-2), "attention mismatch"

    k1, k2, k3 = jax.random.split(key, 3)
    # small shapes consistent with the module (single q-tile, with mask)
    run_case(B=2, Lq=8, Lk=8, D=32, Dv=32, block_q=128, use_mask=True, k=k1)
    # no-mask variant (masking branch compiled out)
    run_case(B=2, Lq=8, Lk=8, D=32, Dv=32, block_q=128, use_mask=False, k=k2)
    # exercise q-tiling with K/V kept resident: grid = (2, 2)
    run_case(B=2, Lq=256, Lk=128, D=64, Dv=64, block_q=128, use_mask=True, k=k3)

    print("KERNEL_OK")
</pallas_src>

<mosaic_0001>
module attributes {stable_mosaic.version = 11 : i64} {
  func.func @_sdpa_kernel(%arg0: i32, %arg1: i32, %arg2: memref<1x8x32xf32, #tpu.memory_space<vmem>>, %arg3: memref<1x8x32xf32, #tpu.memory_space<vmem>>, %arg4: memref<1x8x32xf32, #tpu.memory_space<vmem>>, %arg5: memref<1x8x8xf32, #tpu.memory_space<vmem>>, %arg6: memref<1x8x32xf32, #tpu.memory_space<vmem>>, %arg7: memref<1x8x8xf32, #tpu.memory_space<vmem>>) attributes {dimension_semantics = [#tpu.dimension_semantics<parallel>, #tpu.dimension_semantics<parallel>], iteration_bounds = array<i64: 2, 1>, scalar_prefetch = 0 : i64, scratch_operands = 0 : i64, tpu.core_type = #tpu.core_type<tc>, window_params = [{transform_indices = @transform_0, window_bounds = array<i64: 1, 8, 32>}, {transform_indices = @transform_1, window_bounds = array<i64: 1, 8, 32>}, {transform_indices = @transform_2, window_bounds = array<i64: 1, 8, 32>}, {transform_indices = @transform_3, window_bounds = array<i64: 1, 8, 8>}, {transform_indices = @transform_4, window_bounds = array<i64: 1, 8, 32>}, {transform_indices = @transform_5, window_bounds = array<i64: 1, 8, 8>}]} {
    %c0 = arith.constant 0 : index
    %c0_0 = arith.constant 0 : index
    %c0_1 = arith.constant 0 : index
    %0 = vector.load %arg2[%c0, %c0_0, %c0_1] : memref<1x8x32xf32, #tpu.memory_space<vmem>>, vector<1x8x32xf32>
    %1 = vector.shape_cast %0 : vector<1x8x32xf32> to vector<8x32xf32>
    %cst = arith.constant 0.176776692 : f32
    %2 = vector.broadcast %cst : f32 to vector<8x32xf32>
    %3 = arith.mulf %1, %2 : vector<8x32xf32>
    %4 = arith.truncf %3 : vector<8x32xf32> to vector<8x32xbf16>
    %c0_2 = arith.constant 0 : index
    %c0_3 = arith.constant 0 : index
    %c0_4 = arith.constant 0 : index
    %5 = vector.load %arg3[%c0_2, %c0_3, %c0_4] : memref<1x8x32xf32, #tpu.memory_space<vmem>>, vector<1x8x32xf32>
    %6 = vector.shape_cast %5 : vector<1x8x32xf32> to vector<8x32xf32>
    %7 = arith.truncf %6 : vector<8x32xf32> to vector<8x32xbf16>
    %cst_5 = arith.constant dense<0.000000e+00> : vector<8x8xf32>
    %8 = tpu.matmul %4, %7, %cst_5 {dimension_numbers = #tpu.dot_dimension_numbers<[1], [1], [0], [0], [0, 0, 1, 0], [], []>} : vector<8x32xbf16>, vector<8x32xbf16>, vector<8x8xf32> -> vector<8x8xf32>
    %c0_6 = arith.constant 0 : index
    %c0_7 = arith.constant 0 : index
    %c0_8 = arith.constant 0 : index
    %9 = vector.load %arg5[%c0_6, %c0_7, %c0_8] : memref<1x8x8xf32, #tpu.memory_space<vmem>>, vector<1x8x8xf32>
    %10 = vector.shape_cast %9 : vector<1x8x8xf32> to vector<8x8xf32>
    %cst_9 = arith.constant 0.000000e+00 : f32
    %11 = vector.broadcast %cst_9 : f32 to vector<8x8xf32>
    %12 = arith.cmpf oeq, %10, %11 : vector<8x8xf32>
    %cst_10 = arith.constant -1.000000e+09 : f32
    %13 = vector.broadcast %cst_10 : f32 to vector<8x8xf32>
    %14 = arith.select %12, %13, %8 : vector<8x8xi1>, vector<8x8xf32>
    %cst_11 = arith.constant dense<0xFF800000> : vector<8xf32>
    %15 = vector.multi_reduction <maximumf>, %14, %cst_11 [1] : vector<8x8xf32> to vector<8xf32>
    %16 = vector.shape_cast %15 : vector<8xf32> to vector<8x1xf32>
    %17 = vector.broadcast %16 : vector<8x1xf32> to vector<8x8xf32>
    %18 = arith.subf %14, %17 : vector<8x8xf32>
    %19 = math.exp %18 : vector<8x8xf32>
    %cst_12 = arith.constant dense<0.000000e+00> : vector<8xf32>
    %20 = vector.multi_reduction <add>, %19, %cst_12 [1] : vector<8x8xf32> to vector<8xf32>
    %21 = vector.shape_cast %20 : vector<8xf32> to vector<8x1xf32>
    %cst_13 = arith.constant 1.000000e+00 : f32
    %22 = vector.broadcast %cst_13 : f32 to vector<8x1xf32>
    %23 = arith.divf %22, %21 : vector<8x1xf32>
    %24 = vector.broadcast %23 : vector<8x1xf32> to vector<8x8xf32>
    %25 = arith.mulf %19, %24 : vector<8x8xf32>
    %c0_14 = arith.constant 0 : index
    %c0_15 = arith.constant 0 : index
    %c0_16 = arith.constant 0 : index
    %26 = vector.load %arg7[%c0_14, %c0_15, %c0_16] : memref<1x8x8xf32, #tpu.memory_space<vmem>>, vector<1x8x8xf32>
    %27 = vector.shape_cast %26 : vector<1x8x8xf32> to vector<8x8xf32>
    %28 = vector.shape_cast %25 : vector<8x8xf32> to vector<1x8x8xf32>
    tpu.vector_store %arg7[%c0_14, %c0_15, %c0_16], %28 {strides = array<i32>} : memref<1x8x8xf32, #tpu.memory_space<vmem>>, vector<1x8x8xf32>,
    %29 = arith.truncf %25 : vector<8x8xf32> to vector<8x8xbf16>
    %c0_17 = arith.constant 0 : index
    %c0_18 = arith.constant 0 : index
    %c0_19 = arith.constant 0 : index
    %30 = vector.load %arg4[%c0_17, %c0_18, %c0_19] : memref<1x8x32xf32, #tpu.memory_space<vmem>>, vector<1x8x32xf32>
    %31 = vector.shape_cast %30 : vector<1x8x32xf32> to vector<8x32xf32>
    %32 = arith.truncf %31 : vector<8x32xf32> to vector<8x32xbf16>
    %cst_20 = arith.constant dense<0.000000e+00> : vector<8x32xf32>
    %33 = tpu.matmul %29, %32, %cst_20 {dimension_numbers = #tpu.dot_dimension_numbers<[1], [0], [0], [1], [0, 0, 1, 1], [], []>} : vector<8x8xbf16>, vector<8x32xbf16>, vector<8x32xf32> -> vector<8x32xf32>
    %c0_21 = arith.constant 0 : index
    %c0_22 = arith.constant 0 : index
    %c0_23 = arith.constant 0 : index
    %34 = vector.load %arg6[%c0_21, %c0_22, %c0_23] : memref<1x8x32xf32, #tpu.memory_space<vmem>>, vector<1x8x32xf32>
    %35 = vector.shape_cast %34 : vector<1x8x32xf32> to vector<8x32xf32>
    %36 = vector.shape_cast %33 : vector<8x32xf32> to vector<1x8x32xf32>
    tpu.vector_store %arg6[%c0_21, %c0_22, %c0_23], %36 {strides = array<i32>} : memref<1x8x32xf32, #tpu.memory_space<vmem>>, vector<1x8x32xf32>,
    return
  }
  func.func @transform_0(%arg0: i32, %arg1: i32) -> (i32, i32, i32) {
    %c0_i32 = arith.constant 0 : i32
    %c0_i32_0 = arith.constant 0 : i32
    return %arg0, %arg1, %c0_i32 : i32, i32, i32
  }
  func.func @transform_1(%arg0: i32, %arg1: i32) -> (i32, i32, i32) {
    %c0_i32 = arith.constant 0 : i32
    %c0_i32_0 = arith.constant 0 : i32
    %c0_i32_1 = arith.constant 0 : i32
    return %arg0, %c0_i32, %c0_i32_0 : i32, i32, i32
  }
  func.func @transform_2(%arg0: i32, %arg1: i32) -> (i32, i32, i32) {
    %c0_i32 = arith.constant 0 : i32
    %c0_i32_0 = arith.constant 0 : i32
    %c0_i32_1 = arith.constant 0 : i32
    return %arg0, %c0_i32, %c0_i32_0 : i32, i32, i32
  }
  func.func @transform_3(%arg0: i32, %arg1: i32) -> (i32, i32, i32) {
    %c0_i32 = arith.constant 0 : i32
    %c0_i32_0 = arith.constant 0 : i32
    return %arg0, %arg1, %c0_i32 : i32, i32, i32
  }
  func.func @transform_4(%arg0: i32, %arg1: i32) -> (i32, i32, i32) {
    %c0_i32 = arith.constant 0 : i32
    %c0_i32_0 = arith.constant 0 : i32
    return %arg0, %arg1, %c0_i32 : i32, i32, i32
  }
  func.func @transform_5(%arg0: i32, %arg1: i32) -> (i32, i32, i32) {
    %c0_i32 = arith.constant 0 : i32
    %c0_i32_0 = arith.constant 0 : i32
    return %arg0, %arg1, %c0_i32 : i32, i32, i32
  }
}

</mosaic_0001>

<bundles_post_ra>
// kernel: scaled_dot_product_attention.1
= control target key start
LH: loop header
LB: loop body
LE: loop exit
PB: predicated region body
PF: predicated region fallthrough
CT: control target
= control target key end

     0   :  { %s1374_s0 = inlined_call_operand.hbm [shape: f32[2,8,32], index: 0, kind: input, shape index: {}]   ;;  %s1375_s1 = inlined_call_operand.hbm [shape: f32[2,8,32], index: 1, kind: input, shape index: {}]   ;;  %s1376_s2 = inlined_call_operand.hbm [shape: f32[2,8,32], index: 2, kind: input, shape index: {}]   ;;  %s1377_s3 = inlined_call_operand.hbm [shape: f32[2,8,8], index: 3, kind: input, shape index: {}]   ;;  %s1378_s4 = inlined_call_operand.hbm [shape: f32[2,8,32], index: 4, kind: output, shape index: {0}]   ;;  %s1379_s5 = inlined_call_operand.hbm [shape: f32[2,8,8], index: 5, kind: output, shape index: {1}]  }
   0x1   :  { %1385 = sst [smem:[#allocation23_spill]] %s1375_s1 }
   0x2   :  { %11 = vsyncpa [#allocation3], 0 }
   0x3   :  { %13 = vsyncpa [#allocation3 + $0x1], 0 }
   0x4   :  { %14 = vsyncpa [#allocation6], 0 }
   0x5   :  { %16 = vsyncpa [#allocation6 + $0x1], 0 }
   0x6   :  { %17 = vsyncpa [#allocation9], 0 }
   0x7   :  { %19 = vsyncpa [#allocation9 + $0x1], 0 }
   0x8   :  { %20 = vsyncpa [#allocation4], 0 }
   0x9   :  { %22 = vsyncpa [#allocation4 + $0x1], 0 }
   0xa   :  { %23 = vsyncpa [#allocation12], 0 }
   0xb   :  { %25 = vsyncpa [#allocation12 + $0x1], 0  ;;  %s1117_s18 = smov 0   ;;  %s1119_s19 = smov 0  }
   0xc   :  { %s1121_s20 = smov 0   ;;  %s1123_s21 = smov 0  }
   0xd   :  { %s1125_s22 = smov 0   ;;  %s1127_s23 = smov 0  }
   0xe LB: > { %1386 = sst [smem:[#allocation18_spill]] %s1065_s20  ;;  %s1148_s24 = sadd.s32 4294967295, %s1077_s23   ;;  %s1077_s23 = sphi %s1127_s23, %s31_s23   ;;  %s1073_s22 = sphi %s1125_s22, %s1403_s22   ;;  %s1069_s21 = sphi %s1123_s21, %s1402_s21   ;;  %s1065_s20 = sphi %s1121_s20, %s1401_s20   ;;  %s1061_s19 = sphi %s1119_s19, %s1405_s19   ;;  %s1057_s18 = sphi %s1117_s18, %s1404_s18  }
   0xf   : > { %1387 = sst [smem:[#allocation19_spill]] %s1073_s22  ;;  %s717_s25 = sadd.s32 4294967294, %s1077_s23  }
  0x10   : > { %1388 = sst [smem:[#allocation20_spill]] %s1077_s23  ;;  %s43_s26 = sadd.s32 1, %s1073_s22 }
  0x11   : > { %s52_s27 = sadd.s32 1, %s1065_s20  ;;  %p45_p0 = scmp.ge.s32.totalorder %s43_s26, 2 }
  0x12   : > { %p59_p1 = scmp.ne.s32.totalorder %s1065_s20, %s1061_s19  ;;  %p60_p2 = scmp.eq.s32.totalorder %s1077_s23, 0 }
  0x13   : > { %p65_p3 = scmp.ne.s32.totalorder %s1061_s19, %s1057_s18  ;;  %s1407_s26 = smov (%p45_p0, %s43_s26), 0 }
  0x14   : > { %1389 = sst [smem:[#allocation21_spill]] %s1407_s26  ;;  %p1160_p4 = por %p60_p2, %p59_p1 }
  0x15   : > { %p66_p5 = scmp.eq.s32.totalorder %s1148_s24, 0  ;;  %s47_s29 = ssub.s32 %s1073_s22, %s1407_s26 }
  0x16   : > { %p171_p6 = scmp.eq.s32.totalorder %s1148_s24, 1  ;;  %p50_p7 = scmp.eq.s32.totalorder %s47_s29, 0 }
  0x17   : > { %p1168_p8 = por %p66_p5, %p65_p3  ;;  %p177_p10 = scmp.eq.s32.totalorder %s717_s25, 1 }
  0x18   : > { %p1172_p9 = por %p171_p6, %p59_p1  ;;  %p791_p13 = scmp.lt.s32.totalorder %s1077_s23, 2 }
  0x19   : > { %s1177_s7 = scalar_select %p50_p7, %s1065_s20, %s52_s27  }
  0x1a   : > { %p1179_p11 = por %p177_p10, %p65_p3  ;;  %s1186_s9 = sand.u32 1, %s1065_s20  }
  0x1b   : > { %1393 = sst [smem:[#allocation22_spill]] %s1177_s7  ;;  %s1189_s10 = sshll.u32 %s1186_s9, 3 }
  0x1c   : > { %s1192_s11 = sshll.u32 %s1073_s22, 7  ;;  %p1196_p0 = pnand %p791_p13, %p1160_p4 }
  0x1d   : > { %s244_s13 = sand.u32 1, %s1077_s23   ;;  %s1396_s1 = sld [smem:[#allocation23_spill]] }
  0x1e   : > { %s248_s17 = scalar_lea.vmem [#allocation5], %s1189_s10  ;;  %p728_p1 = scmp.ge.s32.totalorder %s1077_s23, 1 }
  0x1f   : > { %s255_s25 = sshll.u32 %s248_s17, 4  ;;  %p297_p2 = scmp.lt.s32.totalorder %s1077_s23, 3  ;;  %s256_s25 = int_to_ptr.vmem [resolvable:$true] %s255_s25 }
  0x20   : > { %s1208_s27 = scalar_lea.sflag [#allocation6], %s244_s13  ;;  %p849_p3 = pneg %p1196_p0 }
  0x21   : > { %s860_s28 = scalar_lea.vmem %s256_s25, 128  ;;  %s1079_s29 = smov [#allocation5]  }
  0x22   : > { %p861_p4 = scmp.ne.s32.totalorder %s256_s25, %s860_s28  ;;  %s865_s26 = sshll.u32 %s1079_s29, 4  ;;  %s866_s26 = int_to_ptr.vmem [resolvable:$false] %s865_s26 }
  0x23   : > { %s253_s16 = scalar_lea.hbm %s1396_s1, %s1192_s11  ;;  %s867_s14 = scalar_lea.vmem %s866_s26, 256 }
  0x24   : > { %p863_p5 = pnand %p861_p4, %p849_p3  ;;  %p868_p7 = scmp.lt.s32.totalorder %s256_s25, %s866_s26 }
  0x25   : > { %p869_p10 = scmp.lt.s32.totalorder %s867_s14, %s860_s28 }
  0x26   : > { %p864_p6 = pneg %p863_p5 }
  0x27   : > { %p870_p13 = por %p869_p10, %p868_p7 }
  0x29   : > { %p871_p12 = pnand %p870_p13, %p864_p6 }
  0x2b   : > { %874 = shalt.err (!%p871_p12)
}
  0x2c   : > { %777 = dma.hbm_to_vmem [thread:$0]  (!%p1196_p0), %s253_s16, 128, %s256_s25, %s1208_s27  }
  0x2d   : > { %p1222_p4 = pnand %p728_p1, %p297_p2  ;;  %s235_s17 = scalar_lea.hbm %s1374_s0, %s1192_s11 }
  0x2e   : > { %s229_s28 = scalar_lea.vmem [#allocation2], %s1189_s10  ;;  %s271_s22 = scalar_lea.hbm %s1376_s2, %s1192_s11 }
  0x2f   : > { %s237_s29 = sshll.u32 %s229_s28, 4  ;;  %s226_s7 = scalar_lea.sflag [#allocation3], %s1186_s9  ;;  %s238_s29 = int_to_ptr.vmem [resolvable:$true] %s237_s29 }
  0x30   : > { %s888_s20 = scalar_lea.vmem %s238_s29, 128  ;;  %s1080_s16 = smov [#allocation2]  }
  0x31   : > { %p889_p12 = scmp.ne.s32.totalorder %s238_s29, %s888_s20  ;;  %s893_s25 = sshll.u32 %s1080_s16, 4  ;;  %s894_s25 = int_to_ptr.vmem [resolvable:$false] %s893_s25 }
  0x32   : > { %s895_s23 = scalar_lea.vmem %s894_s25, 256  ;;  %p896_p5 = scmp.lt.s32.totalorder %s238_s29, %s894_s25 }
  0x33   : > { %p891_p1 = pnand %p889_p12, %p849_p3  ;;  %p897_p6 = scmp.lt.s32.totalorder %s895_s23, %s888_s20 }
  0x35   : > { %p892_p2 = pneg %p891_p1  ;;  %p898_p7 = por %p897_p6, %p896_p5 }
  0x37   : > { %p899_p10 = pnand %p898_p7, %p892_p2 }
  0x39   : > { %902 = shalt.err (!%p899_p10)
}
  0x3a   : > { %774 = dma.hbm_to_vmem [thread:$0]  (!%p1196_p0), %s235_s17, 128, %s238_s29, %s226_s7  }
  0x3b   : > { %s266_s1 = scalar_lea.vmem [#allocation7], %s1189_s10  ;;  %s1081_s28 = smov [#allocation7]  }
  0x3c   : > { %s273_s26 = sshll.u32 %s266_s1, 4  ;;  %s921_s14 = sshll.u32 %s1081_s28, 4  ;;  %s274_s26 = int_to_ptr.vmem [resolvable:$true] %s273_s26  ;;  %s922_s14 = int_to_ptr.vmem [resolvable:$false] %s921_s14 }
  0x3d   : > { %s916_s15 = scalar_lea.vmem %s274_s26, 128  ;;  %s923_s20 = scalar_lea.vmem %s922_s14, 256 }
  0x3e   : > { %p917_p13 = scmp.ne.s32.totalorder %s274_s26, %s916_s15  ;;  %p924_p2 = scmp.lt.s32.totalorder %s274_s26, %s922_s14 }
  0x3f   : > { %p925_p5 = scmp.lt.s32.totalorder %s923_s20, %s916_s15 }
  0x40   : > { %p919_p12 = pnand %p917_p13, %p849_p3 }
  0x41   : > { %p926_p6 = por %p925_p5, %p924_p2 }
  0x42   : > { %p920_p1 = pneg %p919_p12 }
  0x44   : > { %p927_p7 = pnand %p926_p6, %p920_p1 }
  0x46   : > { %930 = shalt.err (!%p927_p7)
}
  0x47   : > { %780 = dma.hbm_to_vmem [thread:$0]  (!%p1196_p0), %s271_s22, 128, %s274_s26, %s1208_s27  }
  0x48   : > { %s290_s16 = scalar_lea.hbm %s1377_s3, %s1192_s11  ;;  %s284_s25 = scalar_lea.vmem [#allocation8], %s1189_s10 }
  0x49   : > { %s292_s1 = sshll.u32 %s284_s25, 4  ;;  %s281_s15 = scalar_lea.sflag [#allocation9], %s1186_s9  ;;  %s293_s1 = int_to_ptr.vmem [resolvable:$true] %s292_s1 }
  0x4a   : > { %s944_s28 = scalar_lea.vmem %s293_s1, 128  ;;  %s1082_s14 = smov [#allocation8]  }
  0x4b   : > { %p945_p10 = scmp.ne.s32.totalorder %s293_s1, %s944_s28  ;;  %s949_s20 = sshll.u32 %s1082_s14, 4  ;;  %s950_s20 = int_to_ptr.vmem [resolvable:$false] %s949_s20 }
  0x4c   : > { %s951_s23 = scalar_lea.vmem %s950_s20, 256  ;;  %p952_p1 = scmp.lt.s32.totalorder %s293_s1, %s950_s20 }
  0x4d   : > { %p947_p13 = pnand %p945_p10, %p849_p3  ;;  %p953_p2 = scmp.lt.s32.totalorder %s951_s23, %s944_s28 }
  0x4f   : > { %p948_p12 = pneg %p947_p13  ;;  %p954_p5 = por %p953_p2, %p952_p1 }
  0x51   : > { %p955_p6 = pnand %p954_p5, %p948_p12 }
  0x53   : > { %958 = shalt.err (!%p955_p6)
}
  0x54   : > { %783 = dma.hbm_to_vmem [thread:$0]  (!%p1196_p0), %s290_s16, 128, %s293_s1, %s281_s15  }
  0x55   : > { %301 = sbr.rel (%p1222_p4) target bundleno = 825 (0x339), region = 36  ;;  %s1267_s22 = sand.u32 (!%p1222_p4), 1, %s1061_s19  }
  0x56   : > { %s1270_s9 = sshll.u32 (!%p1222_p4), %s1267_s22, 3  ;;  %s304_s10 = scalar_lea.sflag (!%p1222_p4), [#allocation3], %s1267_s22 }
  0x57   : > { %s307_s11 = scalar_lea.vmem (!%p1222_p4), [#allocation2], %s1270_s9 }
  0x5a   : > { %1036 = dma.done.wait (%p1168_p8), %s304_s10, 128  }
  0x5b   : > { %1038 = vsyncadd (%p1168_p8), %s304_s10, 4294967168  ;;  %s312_s12 = sand.u32 1, %s1148_s24   ;;  %s316_s13 = scalar_lea.vmem [#allocation5], %s1270_s9 }
  0x5c   : > { %s313_s27 = scalar_lea.sflag [#allocation6], %s312_s12 }
  0x5d   : > { %1040 = dma.done.wait (%p1168_p8), %s313_s27, 256  }
  0x5e   : > { %1042 = vsyncadd (%p1168_p8), %s313_s27, 4294967040  ;;  %s325_s26 = scalar_lea.vmem [#allocation7], %s1270_s9  ;;  %s331_s7 = scalar_lea.sflag [#allocation9], %s1267_s22 }
  0x5f   : > { %s334_s17 = scalar_lea.vmem [#allocation8], %s1270_s9 }
  0x60   : > { %1044 = dma.done.wait (%p1168_p8), %s331_s7, 128  }
  0x61   : > { %1046 = vsyncadd (%p1168_p8), %s331_s7, 4294967168  ;;  %v1083_v0 = vmov 0.0   ;;  %vm1084_vm0 = vmmov 0   ;;  %v385_v1 = vld [vmem:[%s316_s13] sm:$0xff]  ;;  %vm387_vm1 = vcmask 261120   ;;  %v382_v2 = vld [vmem:[%s307_s11] sm:$0xff] }
  0x62   : > { %747 = vmatprep.subr.bf16.mxu0 %v1083_v0  ;;  %749 = vmatprep.mubr.msk.bf16.mxu0 %vm1084_vm0, %v1083_v0  ;;  %v386_v3 = vpack.c.bf16 %v385_v1, %v385_v1  ;;  %v383_v5 = vmul.f32 0.17677669, %v382_v2  ;;  %v434_v7 = vld [vmem:[%s334_s17] sm:$0xff]  ;;  %vm437_vm3 = vcmask 64512   ;;  %v452_v19 = vld [vmem:[%s325_s26] sm:$0xff]  ;;  %vm457_vm4 = vcmask 1043456  }
  0x63   : > { %753 = vmatprep.subr.bf16.mxu1 %v1083_v0  ;;  %755 = vmatprep.mubr.msk.bf16.mxu1 %vm1084_vm0, %v1083_v0  ;;  %vm435_vm2 = vcmp.eq.f32.partialorder %v434_v7, 0.0  ;;  %v453_v20 = vpack.c.bf16 %v452_v19, %v452_v19  ;;  %s380_s24 = scalar_lea.vmem [#allocation11], %s1270_s9  ;;  %s739_s30 = sshll.u32 %s1069_s21, 7 }
  0x64   : > { %v392_v4 = vsel %vm387_vm1, %v386_v3, 0  ;;  %v384_v6 = vpack.c.bf16 %v383_v5, %v383_v5  ;;  %s534_s25 = scalar_lea.hbm %s1379_s5, %s739_s30  ;;  %s536_s1 = sshll.u32 %s380_s24, 4  ;;  %s537_s1 = int_to_ptr.vmem [resolvable:$true] %s536_s1 }
  0x65   : > { %748 = vmatpush3.bf16.xpose.msra.mxu0 %v392_v4  ;;  %v459_v21 = vsel %vm457_vm4, %v453_v20, 0  ;;  %s508_s15 = scalar_lea.sflag [#allocation12], %s1267_s22  ;;  %s959_s28 = scalar_lea.vmem %s537_s1, 128 }
  0x66   : > { %754 = vmatpush3.bf16.msra.mxu1 %v459_v21  ;;  %p960_p8 = scmp.ne.s32.totalorder %s537_s1, %s959_s28  ;;  %s1085_s14 = smov [#allocation11]  }
  0x67   : > { %s963_s20 = sshll.u32 %s1085_s14, 4  ;;  %s964_s20 = int_to_ptr.vmem [resolvable:$false] %s963_s20 }
  0x68   : > { %p961_p0 = pnand %p960_p8, %p1172_p9  ;;  %s965_s23 = scalar_lea.vmem %s964_s20, 256 }
  0x69   : > { %p966_p4 = scmp.lt.s32.totalorder %s537_s1, %s964_s20  ;;  %p967_p7 = scmp.lt.s32.totalorder %s965_s23, %s959_s28 }
  0x6a   : > { %p962_p3 = pneg %p961_p0 }
  0x6b   : > { %p968_p10 = por %p967_p7, %p966_p4 }
  0x6c   : > { %750 = vmatmul.mubr.msk.bf16.vlgmr.msra.gmra.mxu0 %vm387_vm1, %v384_v6 }
  0x6d   : > { %p969_p13 = pnand %p968_p10, %p962_p3 }
 0x12c   : > { %v428_v8 = vpop.f32.mrf.mxu0 }
 0x12d   : > { %v436_v9 = vsel %vm435_vm2, -1e+09, %v428_v8 }
 0x12e   : > { %v751_v10 = vpop.f32.mrf.mxu0  ;;  %v438_v11 = vsel %vm437_vm3, %v436_v9, -inf }
 0x12f   : > { %439 = vmax.xlane.f32.xlu0 %v438_v11 }
 0x130   : > { %v431_v12 = vpop.f32.mrf.mxu0 }
 0x132   : > { %v752_v13 = vpop.f32.mrf.mxu0 }
 0x1b8   : > { %v440_v14 = vpop.xlane.xlu0 %439 }
 0x1b9   : > { %v441_v15 = vsub.f32 %v436_v9, %v440_v14 }
 0x1bb   : > { %v442_v16 = vmul.f32 1.442695, %v441_v15 }
 0x1bd   : > { %843 = vpow2.f32 %v442_v16 }
 0x1ca   : > { %v844_v17 = vpop.eup %843 }
 0x1cb   : > { %v444_v18 = vsel %vm437_vm3, %v844_v17, 0.0 }
 0x1cc   : > { %445 = vadd.xlane.f32.xlu0 %v444_v18 }
 0x255   : > { %v446_v22 = vpop.xlane.xlu0 %445 }
 0x256   : > { %845 = vrcp.f32 %v446_v22 }
 0x263   : > { %v846_v23 = vpop.eup %845 }
 0x264   : > { %v449_v24 = vmul.f32 %v846_v23, %v844_v17 }
 0x266   : > { %v451_v25 = vpack.c.bf16 %v449_v24, %v449_v24  ;;  %450 = vst.msk [vmem:[%s380_s24] sm:$0xff] %vm437_vm3, %v449_v24 }
 0x268   : > { %756 = vmatmul.mubr.msk.bf16.vlgmr.msra.gmra.mxu1 %vm437_vm3, %v451_v25 }
 0x269   : > { %972 = shalt.err (!%p969_p13)
}
 0x26a   : > { %s973_s10 = scalar_lea.hbm %s534_s25, 128  ;;  %s977_s27 = scalar_lea.hbm %s1379_s5, 256 }
 0x26b   : > { %p974_p12 = scmp.ne.s32.totalorder %s534_s25, %s973_s10  ;;  %p978_p5 = scmp.lt.s32.totalorder %s534_s25, %s1379_s5 }
 0x26c   : > { %p979_p6 = scmp.lt.s32.totalorder %s977_s27, %s973_s10 }
 0x26d   : > { %p975_p1 = pnand %p974_p12, %p1172_p9 }
 0x26e   : > { %p980_p8 = por %p979_p6, %p978_p5 }
 0x26f   : > { %p976_p2 = pneg %p975_p1 }
 0x271   : > { %p981_p0 = pnand %p980_p8, %p976_p2 }
 0x273   : > { %984 = shalt.err (!%p981_p0)
}
 0x274   : > { %768 = dma.vmem_to_hbm [thread:$0]  (%p1172_p9), %s537_s1, 128, %s534_s25, %s508_s15  }
 0x275   : > { %s373_s7 = scalar_lea.vmem [#allocation10], %s1270_s9  ;;  %s1325_s16 = scalar_lea.hbm %s1378_s4, %s739_s30 }
 0x276   : > { %s522_s17 = sshll.u32 %s373_s7, 4  ;;  %s503_s28 = scalar_lea.sflag [#allocation4], %s1267_s22  ;;  %s1327_s17 = int_to_ptr.vmem [resolvable:$true] %s522_s17 }
 0x277   : > { %s985_s14 = scalar_lea.vmem %s1327_s17, 128  ;;  %s1086_s21 = smov [#allocation10]  }
 0x278   : > { %p986_p3 = scmp.ne.s32.totalorder %s1327_s17, %s985_s14  ;;  %s989_s9 = sshll.u32 %s1086_s21, 4  ;;  %s990_s9 = int_to_ptr.vmem [resolvable:$false] %s989_s9 }
 0x279   : > { %s991_s30 = scalar_lea.vmem %s990_s9, 256  ;;  %p992_p10 = scmp.lt.s32.totalorder %s1327_s17, %s990_s9 }
 0x27a   : > { %p987_p4 = pnand %p986_p3, %p1172_p9  ;;  %p993_p13 = scmp.lt.s32.totalorder %s991_s30, %s985_s14 }
 0x27c   : > { %p988_p7 = pneg %p987_p4  ;;  %p994_p12 = por %p993_p13, %p992_p10 }
 0x27e   : > { %p995_p1 = pnand %p994_p12, %p988_p7 }
 0x328   : > { %v495_v26 = vpop.f32.mrf.mxu1 }
 0x329   : > { %501 = vst.msk [vmem:[%s373_s7] sm:$0xff] %vm387_vm1, %v495_v26 }
 0x32a   : > { %v757_v27 = vpop.f32.mrf.mxu1 }
 0x32b   : > { %998 = shalt.err (!%p995_p1)
}
 0x32c   : > { %s999_s25 = scalar_lea.hbm %s1325_s16, 128  ;;  %s1003_s15 = scalar_lea.hbm %s1378_s4, 256 }
 0x32d   : > { %p1000_p2 = scmp.ne.s32.totalorder %s1325_s16, %s999_s25  ;;  %p1004_p8 = scmp.lt.s32.totalorder %s1325_s16, %s1378_s4 }
 0x32e   : > { %p1005_p0 = scmp.lt.s32.totalorder %s1003_s15, %s999_s25 }
 0x32f   : > { %p1001_p5 = pnand %p1000_p2, %p1172_p9 }
 0x330   : > { %p1006_p3 = por %p1005_p0, %p1004_p8 }
 0x331   : > { %p1002_p6 = pneg %p1001_p5 }
 0x333   : > { %p1007_p4 = pnand %p1006_p3, %p1002_p6 }
 0x335   : > { %1010 = shalt.err (!%p1007_p4)
}
 0x336   : > { %767 = dma.vmem_to_hbm [thread:$0]  (%p1172_p9), %s1327_s17, 128, %s1325_s16, %s503_s28   ;;  %v498_v28 = vpop.f32.mrf.mxu1 }
 0x338   : > { %v758_v29 = vpop.f32.mrf.mxu1 }
 0x339 PF: > { %s1398_s10 = sld [smem:[#allocation20_spill]]  ;;  %s548_s11 = sand.u32 1, %s1057_s18  }
 0x33a   : > { %s549_s12 = scalar_lea.sflag [#allocation4], %s548_s11 }
 0x33f   : > { %p1399_p7 = scmp.ge.s32.totalorder %s1398_s10, 2 }
 0x341   : > { %p785_p10 = pnand %p1399_p7, %p1179_p11 }
 0x343   : > { %p786_p13 = pneg %p785_p10 }
 0x345   : > { %1048 = dma.done.wait (%p786_p13), %s549_s12, 128  }
 0x346   : > { %1050 = vsyncadd (%p786_p13), %s549_s12, 4294967168  ;;  %s558_s27 = scalar_lea.sflag [#allocation12], %s548_s11 }
 0x347   : > { %1052 = dma.done.wait (%p786_p13), %s558_s27, 128  }
 0x348   : > { %1054 = vsyncadd (%p786_p13), %s558_s27, 4294967168  ;;  %s31_s23 = sadd.s32 1, %s1398_s10   ;;  %s1400_s6 = sld [smem:[#allocation18_spill]] }
 0x349   : > { %p28_p9 = scmp.ge.s32.totalorder %s31_s23, 4   ;;  %s1401_s20 = sld [smem:[#allocation22_spill]] }
 0x34a   : > { %s1402_s21 = sld [smem:[#allocation19_spill]]  ;;  %s1404_s18 = smov %s1061_s19 }
 0x34b   : > { %s1403_s22 = sld [smem:[#allocation21_spill]]  ;;  %30 = sbr.rel (!%p28_p9) target bundleno = 14 (0xe), region = 135 }
 0x34e   : > { %s1405_s19 = smov %s1400_s6 }
 0x350   :  { %563 = vsyncpa [#allocation3], 1 }
 0x351   :  { %565 = vsyncpa [#allocation3 + $0x1], 1 }
 0x352   :  { %566 = vsyncpa [#allocation6], 1 }
 0x353   :  { %568 = vsyncpa [#allocation6 + $0x1], 1 }
 0x354   :  { %569 = vsyncpa [#allocation9], 1 }
 0x355   :  { %571 = vsyncpa [#allocation9 + $0x1], 1 }
 0x356   :  { %572 = vsyncpa [#allocation4], 1 }
 0x357   :  { %574 = vsyncpa [#allocation4 + $0x1], 1 }
 0x358   :  { %575 = vsyncpa [#allocation12], 1 }
 0x359   :  { %577 = vsyncpa [#allocation12 + $0x1], 1 }

</bundles_post_ra>
